<compile_context>
chip_gen: v7x
topology: tpu7x:2x2x1
jax: 0.10.0
libtpu: 0.0.40
codegen_flags: <defaults>
</compile_context>

<pallas_src>
import jax
import jax.numpy as jnp
from jax import lax
from jax.experimental import pallas as pl
from jax.experimental.pallas import tpu as pltpu

# Sobel weights of the PyTorch module (cross-correlation, no kernel flip):
#   Gx = [[2,0,-2],[4,0,-4],[2,0,-2]] == [1,2,1]^T (rows) x [2,0,-2] (cols)
#   Gy = [[2,4,2],[0,0,0],[-2,-4,-2]] == [2,0,-2]^T (rows) x [1,2,1] (cols)

_HALO_ROWS = 8  # 2 rows of real halo, rounded up to a full sublane multiple.


def _round_up(x: int, m: int) -> int:
    return ((x + m - 1) // m) * m


def _shift_cols_left(a, k: int):
    """Full-width left shift along the last (lane) axis.

    result[..., j] == a[..., j + k] for j < W - k; the last k columns wrap and
    are trimmed by the wrapper.  Same data movement as
    pltpu.roll(a, W - k, axis=-1); written in concat form so the shift
    direction is explicit.
    """
    return jnp.concatenate([a[..., k:], a[..., :k]], axis=-1)


def _sobel_kernel(x_ref, o_ref):
    """x_ref: (1, 1, R_in, W) with R_in >= R_out + 2; o_ref: (1, 2, R_out, W)."""
    r_out = o_ref.shape[2]
    x = x_ref[0, 0].astype(jnp.float32)                 # (R_in, W), f32 accumulation

    # --- Gx: lag-2 column difference, then [1, 2, 1] over rows. ---
    dx = x - _shift_cols_left(x, 2)                     # dx[r, c] = x[r, c] - x[r, c+2]
    gx = 2.0 * (dx[0:r_out] + dx[2:r_out + 2] + 2.0 * dx[1:r_out + 1])

    # --- Gy: lag-2 row difference, then [1, 2, 1] over columns. ---
    sy = x[0:r_out] - x[2:r_out + 2]                    # sy[r, c] = x[r, c] - x[r+2, c]
    gy = 2.0 * (sy + _shift_cols_left(sy, 2) + 2.0 * _shift_cols_left(sy, 1))

    o_ref[0, 0] = gx.astype(o_ref.dtype)                # full-width, lane-dense stores
    o_ref[0, 1] = gy.astype(o_ref.dtype)


def _sobel_pallas(img_pad, tile_h, num_tiles, use_element_indexing, out_dtype):
    n, _, h_pad, w = img_pad.shape
    rows_in = tile_h + _HALO_ROWS

    if use_element_indexing:
        # Overlapping (halo) input windows: element offset i * tile_h on the row dim.
        in_spec = pl.BlockSpec((1, 1, pl.Element(rows_in), w),
                               lambda b, i: (b, 0, i * tile_h, 0))
    else:
        # Single tile covering the whole (padded) image; plain blocked indexing.
        assert num_tiles == 1 and h_pad == rows_in
        in_spec = pl.BlockSpec((1, 1, rows_in, w), lambda b, i: (b, 0, 0, 0))

    return pl.pallas_call(
        _sobel_kernel,
        out_shape=jax.ShapeDtypeStruct((n, 2, num_tiles * tile_h, w), out_dtype),
        grid_spec=pltpu.PrefetchScalarGridSpec(
            num_scalar_prefetch=0,
            grid=(n, num_tiles),
            in_specs=[in_spec],
            out_specs=pl.BlockSpec((1, 2, tile_h, w), lambda b, i: (b, 0, i, 0)),
        ),
        compiler_params=pltpu.CompilerParams(
            # Batch and row-tile axes are independent -> shardable across
            # v7x's two TensorCores; harmless on v5e/v6e.
            dimension_semantics=("parallel", "parallel"),
            vmem_limit_bytes=48 * 1024 * 1024,
        ),
    )(img_pad)


def sobel_forward(img, *, tile_h: int = 256, out_dtype=None):
    """Sobel forward pass: (N, 1, H, W) -> (N, 2, H-2, W-2).

    tile_h: output rows per grid step (rounded to a multiple of 8). The default
        of 256 keeps the double-buffered working set (~24 * tile_h * W bytes)
        well inside v7x's 64 MiB VMEM for images up to ~4K wide; shrink it for
        very wide images.
    out_dtype: output dtype (default: input dtype). Pass jnp.bfloat16 to halve
        output HBM traffic if the consumer tolerates it; accumulation stays f32.
    """
    n, c, h, w = img.shape
    if c != 1:
        raise ValueError("Sobel expects a single input channel (N, 1, H, W).")
    if h < 3 or w < 3:
        raise ValueError("Spatial dims must be at least 3x3.")
    out_dtype = img.dtype if out_dtype is None else out_dtype
    h_out, w_out = h - 2, w - 2

    th = max(8, min(_round_up(tile_h, 8), _round_up(h_out, 8)))
    nt = pl.cdiv(h_out, th)

    def pad_rows_to(rows):
        if rows == h:
            return img
        return jnp.pad(img, ((0, 0), (0, 0), (0, rows - h), (0, 0)))

    if nt > 1:
        try:
            out_full = _sobel_pallas(pad_rows_to(nt * th + _HALO_ROWS), th, nt,
                                     True, out_dtype)
            return out_full[:, :, :h_out, :w_out]
        except Exception:
            # Element-offset (halo) BlockSpecs unavailable in this JAX/Mosaic
            # build: fall back to one whole-image tile per grid step.
            th = _round_up(h_out, 8)
            nt = 1

    out_full = _sobel_pallas(pad_rows_to(nt * th + _HALO_ROWS), th, nt,
                             False, out_dtype)
    return out_full[:, :, :h_out, :w_out]


def sobel_reference(img):
    """Pure-JAX reference (matches torch.nn.Conv2d cross-correlation semantics)."""
    gx = jnp.array([[2.0, 0.0, -2.0], [4.0, 0.0, -4.0], [2.0, 0.0, -2.0]], jnp.float32)
    gy = jnp.array([[2.0, 4.0, 2.0], [0.0, 0.0, 0.0], [-2.0, -4.0, -2.0]], jnp.float32)
    g = jnp.stack([gx, gy], axis=0)[:, None, :, :]      # (2, 1, 3, 3) OIHW
    return lax.conv_general_dilated(
        img.astype(jnp.float32), g, window_strides=(1, 1), padding="VALID",
        dimension_numbers=("NCHW", "OIHW", "NCHW"),
        precision=lax.Precision.HIGHEST)


if __name__ == "__main__":
    key = jax.random.PRNGKey(0)
    k1, k2 = jax.random.split(key)

    # Small smoke test matching the module's natural shapes: N=2, C=1, 16x16.
    x = jax.random.normal(k1, (2, 1, 16, 16), dtype=jnp.float32)
    out = jax.block_until_ready(sobel_forward(x))
    ref = sobel_reference(x)
    assert out.shape == (2, 2, 14, 14), out.shape
    assert jnp.allclose(out, ref, atol=1e-4, rtol=1e-4), "mismatch vs reference conv"

    # Also exercise the multi-row-tile (halo) path with a small tile size.
    x2 = jax.random.normal(k2, (2, 1, 40, 24), dtype=jnp.float32)
    out2 = jax.block_until_ready(sobel_forward(x2, tile_h=16))
    ref2 = sobel_reference(x2)
    assert out2.shape == (2, 2, 38, 22), out2.shape
    assert jnp.allclose(out2, ref2, atol=1e-4, rtol=1e-4), "mismatch vs reference conv (tiled)"

    print("KERNEL_OK")
</pallas_src>

<mosaic_0001>
module attributes {stable_mosaic.version = 11 : i64} {
  func.func @_sobel_kernel(%arg0: i32, %arg1: i32, %arg2: memref<1x1x24x16xf32, #tpu.memory_space<vmem>>, %arg3: memref<1x2x16x16xf32, #tpu.memory_space<vmem>>) attributes {dimension_semantics = [#tpu.dimension_semantics<parallel>, #tpu.dimension_semantics<parallel>], iteration_bounds = array<i64: 2, 1>, scalar_prefetch = 0 : i64, scratch_operands = 0 : i64, tpu.core_type = #tpu.core_type<tc>, window_params = [{transform_indices = @transform_0, window_bounds = array<i64: 1, 1, 24, 16>}, {transform_indices = @transform_1, window_bounds = array<i64: 1, 2, 16, 16>}]} {
    %c0 = arith.constant 0 : index
    %c0_0 = arith.constant 0 : index
    %c0_1 = arith.constant 0 : index
    %c0_2 = arith.constant 0 : index
    %0 = vector.load %arg2[%c0, %c0_0, %c0_1, %c0_2] : memref<1x1x24x16xf32, #tpu.memory_space<vmem>>, vector<1x1x24x16xf32>
    %1 = vector.shape_cast %0 : vector<1x1x24x16xf32> to vector<24x16xf32>
    %2 = vector.extract_strided_slice %1 {offsets = [0, 2], sizes = [24, 14], strides = [1, 1]} : vector<24x16xf32> to vector<24x14xf32>
    %3 = vector.extract_strided_slice %1 {offsets = [0, 0], sizes = [24, 2], strides = [1, 1]} : vector<24x16xf32> to vector<24x2xf32>
    %4 = tpu.concatenate %2, %3 in 1 : vector<24x14xf32>, vector<24x2xf32> -> vector<24x16xf32>
    %5 = arith.subf %1, %4 : vector<24x16xf32>
    %6 = vector.extract_strided_slice %5 {offsets = [0, 0], sizes = [16, 16], strides = [1, 1]} : vector<24x16xf32> to vector<16x16xf32>
    %7 = vector.extract_strided_slice %5 {offsets = [2, 0], sizes = [16, 16], strides = [1, 1]} : vector<24x16xf32> to vector<16x16xf32>
    %8 = arith.addf %6, %7 : vector<16x16xf32>
    %9 = vector.extract_strided_slice %5 {offsets = [1, 0], sizes = [16, 16], strides = [1, 1]} : vector<24x16xf32> to vector<16x16xf32>
    %cst = arith.constant 2.000000e+00 : f32
    %10 = vector.broadcast %cst : f32 to vector<16x16xf32>
    %11 = arith.mulf %10, %9 : vector<16x16xf32>
    %12 = arith.addf %8, %11 : vector<16x16xf32>
    %cst_3 = arith.constant 2.000000e+00 : f32
    %13 = vector.broadcast %cst_3 : f32 to vector<16x16xf32>
    %14 = arith.mulf %13, %12 : vector<16x16xf32>
    %15 = vector.extract_strided_slice %1 {offsets = [0, 0], sizes = [16, 16], strides = [1, 1]} : vector<24x16xf32> to vector<16x16xf32>
    %16 = vector.extract_strided_slice %1 {offsets = [2, 0], sizes = [16, 16], strides = [1, 1]} : vector<24x16xf32> to vector<16x16xf32>
    %17 = arith.subf %15, %16 : vector<16x16xf32>
    %18 = vector.extract_strided_slice %17 {offsets = [0, 2], sizes = [16, 14], strides = [1, 1]} : vector<16x16xf32> to vector<16x14xf32>
    %19 = vector.extract_strided_slice %17 {offsets = [0, 0], sizes = [16, 2], strides = [1, 1]} : vector<16x16xf32> to vector<16x2xf32>
    %20 = tpu.concatenate %18, %19 in 1 : vector<16x14xf32>, vector<16x2xf32> -> vector<16x16xf32>
    %21 = arith.addf %17, %20 : vector<16x16xf32>
    %22 = vector.extract_strided_slice %17 {offsets = [0, 1], sizes = [16, 15], strides = [1, 1]} : vector<16x16xf32> to vector<16x15xf32>
    %23 = vector.extract_strided_slice %17 {offsets = [0, 0], sizes = [16, 1], strides = [1, 1]} : vector<16x16xf32> to vector<16x1xf32>
    %24 = tpu.concatenate %22, %23 in 1 : vector<16x15xf32>, vector<16x1xf32> -> vector<16x16xf32>
    %cst_4 = arith.constant 2.000000e+00 : f32
    %25 = vector.broadcast %cst_4 : f32 to vector<16x16xf32>
    %26 = arith.mulf %25, %24 : vector<16x16xf32>
    %27 = arith.addf %21, %26 : vector<16x16xf32>
    %cst_5 = arith.constant 2.000000e+00 : f32
    %28 = vector.broadcast %cst_5 : f32 to vector<16x16xf32>
    %29 = arith.mulf %28, %27 : vector<16x16xf32>
    %c0_6 = arith.constant 0 : index
    %c0_7 = arith.constant 0 : index
    %c0_8 = arith.constant 0 : index
    %c0_9 = arith.constant 0 : index
    %30 = vector.load %arg3[%c0_6, %c0_7, %c0_8, %c0_9] : memref<1x2x16x16xf32, #tpu.memory_space<vmem>>, vector<1x1x16x16xf32>
    %31 = vector.shape_cast %30 : vector<1x1x16x16xf32> to vector<16x16xf32>
    %32 = vector.shape_cast %14 : vector<16x16xf32> to vector<1x1x16x16xf32>
    tpu.vector_store %arg3[%c0_6, %c0_7, %c0_8, %c0_9], %32 {strides = array<i32>} : memref<1x2x16x16xf32, #tpu.memory_space<vmem>>, vector<1x1x16x16xf32>,
    %c0_10 = arith.constant 0 : index
    %c1 = arith.constant 1 : index
    %c0_11 = arith.constant 0 : index
    %c0_12 = arith.constant 0 : index
    %33 = vector.load %arg3[%c0_10, %c1, %c0_11, %c0_12] : memref<1x2x16x16xf32, #tpu.memory_space<vmem>>, vector<1x1x16x16xf32>
    %34 = vector.shape_cast %33 : vector<1x1x16x16xf32> to vector<16x16xf32>
    %35 = vector.shape_cast %29 : vector<16x16xf32> to vector<1x1x16x16xf32>
    tpu.vector_store %arg3[%c0_10, %c1, %c0_11, %c0_12], %35 {strides = array<i32>} : memref<1x2x16x16xf32, #tpu.memory_space<vmem>>, vector<1x1x16x16xf32>,
    return
  }
  func.func @transform_0(%arg0: i32, %arg1: i32) -> (i32, i32, i32, i32) {
    %c0_i32 = arith.constant 0 : i32
    %c0_i32_0 = arith.constant 0 : i32
    %c0_i32_1 = arith.constant 0 : i32
    %c0_i32_2 = arith.constant 0 : i32
    return %arg0, %c0_i32, %c0_i32_0, %c0_i32_1 : i32, i32, i32, i32
  }
  func.func @transform_1(%arg0: i32, %arg1: i32) -> (i32, i32, i32, i32) {
    %c0_i32 = arith.constant 0 : i32
    %c0_i32_0 = arith.constant 0 : i32
    %c0_i32_1 = arith.constant 0 : i32
    return %arg0, %c0_i32, %arg1, %c0_i32_0 : i32, i32, i32, i32
  }
}

</mosaic_0001>

<bundles_post_ra>
// kernel: tpu_custom_call.1
= control target key start
LH: loop header
LB: loop body
LE: loop exit
PB: predicated region body
PF: predicated region fallthrough
CT: control target
= control target key end

     0   :  { %6 = vsyncpa [#allocation3], 0  ;;  %s655_s0 = inlined_call_operand.vmem [shape: f32[2,1,24,16], index: 0, kind: input, shape index: {}]   ;;  %s656_s1 = inlined_call_operand.hbm [shape: f32[2,2,16,16], index: 1, kind: output, shape index: {}]  }
   0x1   :  { %8 = vsyncpa [#allocation3 + $0x1], 0  ;;  %s509_s6 = smov 0   ;;  %s511_s7 = smov 0  }
   0x2   :  { %s513_s8 = smov 0   ;;  %s515_s9 = smov 0  }
   0x3   :  { %s517_s10 = smov 0   ;;  %s519_s11 = smov 0  }
   0x4 LB: > { %s335_s12 = sadd.s32 4294967295, %s490_s11   ;;  %s336_s13 = sadd.s32 4294967294, %s490_s11   ;;  %s490_s11 = sphi %s519_s11, %s14_s11   ;;  %s486_s10 = sphi %s517_s10, %s663_s10   ;;  %s482_s9 = sphi %s515_s9, %s662_s9   ;;  %s478_s8 = sphi %s513_s8, %s661_s8   ;;  %s474_s7 = sphi %s511_s7, %s660_s7   ;;  %s470_s6 = sphi %s509_s6, %s659_s6  }
   0x5   : > { %s26_s14 = sadd.s32 1, %s486_s10  ;;  %s61_s15 = sadd.s32 1, %s478_s8 }
   0x6   : > { %p28_p0 = scmp.ge.s32.totalorder %s26_s14, 2  ;;  %p71_p1 = scmp.ne.s32.totalorder %s478_s8, %s474_s7 }
   0x7   : > { %p72_p2 = scmp.eq.s32.totalorder %s335_s12, 1  ;;  %p77_p3 = scmp.ne.s32.totalorder %s474_s7, %s470_s6 }
   0x8   : > { %s665_s14 = smov (%p28_p0, %s26_s14), 0  ;;  %p78_p5 = scmp.eq.s32.totalorder %s336_s13, 1 }
   0x9   : > { %p549_p4 = por %p72_p2, %p71_p1  ;;  %s56_s17 = ssub.s32 %s486_s10, %s665_s14 }
   0xa   : > { %p339_p6 = scmp.ge.s32.totalorder %s490_s11, 1  ;;  %p59_p7 = scmp.eq.s32.totalorder %s56_s17, 0 }
   0xb   : > { %p556_p8 = por %p78_p5, %p77_p3  ;;  %p104_p9 = scmp.lt.s32.totalorder %s490_s11, 3 }
   0xc   : > { %s562_s19 = scalar_select %p59_p7, %s478_s8, %s61_s15  }
   0xd   : > { %p105_p10 = pnand %p339_p6, %p104_p9 }
   0xe   : > { %p124_p11 = scmp.lt.s32.totalorder (!%p105_p10), %s482_s9, 1  ;;  %s492_s25 = smov (!%p105_p10), 126   ;;  %vm164_vm0 = vcmask (!%p105_p10), 1045504   ;;  %vm154_vm1 = vcmask (!%p105_p10), 113664   ;;  %vm180_vm2 = vcmask (!%p105_p10), 1046528   ;;  %vm240_vm3 = vcmask (!%p105_p10), 130048  }
   0xf   : > { %108 = sbr.rel (%p105_p10) target bundleno = 189 (0xbd), region = 24  ;;  %s493_s26 = smov (!%p105_p10), 14   ;;  %vm231_vm4 = vcmask (!%p105_p10), 121856  }
  0x10   : > { %s494_s27 = smov (!%p105_p10), 127   ;;  %s495_s28 = smov (!%p105_p10), 15  }
  0x11   : > { %s121_s29 = sand.u32 (!%p105_p10), 1, %s474_s7   ;;  %s349_s3 = sshll.u32 (!%p105_p10), %s482_s9, 9 }
  0x12   : > { %s340_s30 = sshll.u32 (!%p105_p10), %s121_s29, 5  ;;  %s601_s13 = scalar_lea.hbm (!%p105_p10), %s656_s1, %s349_s3 }
  0x13   : > { %s123_s2 = scalar_lea.vmem (!%p105_p10), [#allocation2], %s340_s30  ;;  %s496_s17 = smov (!%p105_p10), [#allocation2]  }
  0x14   : > { %s262_s4 = sshll.u32 (!%p105_p10), %s123_s2, 4  ;;  %s603_s4 = int_to_ptr.vmem [resolvable:$true] %s262_s4 }
  0x15   : > { %s412_s15 = scalar_lea.vmem (!%p105_p10), %s603_s4, 512 }
  0x16   : > { %s125_s20 = scalar_select %p124_p11, %s482_s9, 1 }
  0x17   : > { %s609_s9 = scalar_lea.sflag [#allocation3], %s121_s29  ;;  %p413_p12 = scmp.ne.s32.totalorder %s603_s4, %s412_s15 }
  0x18   : > { %s350_s21 = smul.u32 24, %s125_s20  ;;  %s416_s20 = sshll.u32 %s496_s17, 4  ;;  %s417_s20 = int_to_ptr.vmem [resolvable:$false] %s416_s20 }
  0x19   : > { %p414_p13 = pnand %p413_p12, %p549_p4  ;;  %p419_p1 = scmp.lt.s32.totalorder %s603_s4, %s417_s20 }
  0x1a   : > { %s128_s24 = scalar_lea.vmem %s655_s0, %s350_s21  ;;  %s418_s21 = scalar_lea.vmem %s417_s20, 1024 }
  0x1b   : > { %v132_v0 = vld [vmem:[%s128_s24 + $0x10] sm:$0xff]  ;;  %v130_v1 = vld [vmem:[%s128_s24] sm:$0xff]  ;;  %v131_v2 = vld [vmem:[%s128_s24 + $0x8] sm:$0xff]  ;;  %p415_p0 = pneg %p414_p13  ;;  %p420_p2 = scmp.lt.s32.totalorder %s418_s21, %s412_s15 }
  0x1c   : > { %140 = vrot.lane.b32.xlu1 %v132_v0, %s492_s25  ;;  %136 = vrot.lane.b32.xlu0 %v130_v1, %s492_s25  ;;  %v195_v3 = vrot.slane %v132_v0, 2  ;;  %v192_v4 = vrot.slane %v130_v1, 2  ;;  %v193_v5 = vrot.slane %v131_v2, 2 }
  0x1d   : > { %p421_p3 = por %p420_p2, %p419_p1 }
  0x1e   : > { %v196_v6 = vsel %vm164_vm0, %v193_v5, %v195_v3  ;;  %v194_v7 = vsel %vm164_vm0, %v192_v4, %v193_v5 }
  0x1f   : > { %v571_v8 = vsub.f32 %v131_v2, %v196_v6  ;;  %v573_v9 = vsub.f32 %v130_v1, %v194_v7  ;;  %p422_p5 = pnand %p421_p3, %p415_p0 }
  0x20   : > { %145 = vrot.lane.b32.xlu1 %v130_v1, %s493_s26  ;;  %138 = vrot.lane.b32.xlu0 %v131_v2, %s492_s25 }
  0x24   : > { %149 = vrot.lane.b32.xlu1 %v132_v0, %s493_s26  ;;  %147 = vrot.lane.b32.xlu0 %v131_v2, %s493_s26 }
  0x28   : > { %205 = vrot.lane.b32.xlu1 %v571_v8, %s492_s25  ;;  %203 = vrot.lane.b32.xlu0 %v573_v9, %s492_s25 }
  0x2c   : > { %211 = vrot.lane.b32.xlu1 %v571_v8, %s493_s26  ;;  %209 = vrot.lane.b32.xlu0 %v573_v9, %s493_s26 }
  0x30   : > { %221 = vrot.lane.b32.xlu1 %v571_v8, %s494_s27  ;;  %219 = vrot.lane.b32.xlu0 %v573_v9, %s494_s27 }
  0x34   : > { %227 = vrot.lane.b32.xlu1 %v571_v8, %s495_s28  ;;  %225 = vrot.lane.b32.xlu0 %v573_v9, %s495_s28 }
  0x8e   : > { %v141_v10 = vpop.permute.xlu1 %140  ;;  %v137_v11 = vpop.permute.xlu0 %136 }
  0x92   : > { %v146_v12 = vpop.permute.xlu1 %145  ;;  %v139_v13 = vpop.permute.xlu0 %138 }
  0x93   : > { %v155_v14 = vsel %vm154_vm1, %v137_v11, %v146_v12 }
  0x94   : > { %v158_v15 = vsub.f32 %v130_v1, %v155_v14 }
  0x96   : > { %v150_v16 = vpop.permute.xlu1 %149  ;;  %v148_v17 = vpop.permute.xlu0 %147  ;;  %v174_v18 = vmul.f32 2.0, %v158_v15  ;;  %v165_v23 = vrot.slane %v158_v15, 2 }
  0x97   : > { %v157_v19 = vsel %vm154_vm1, %v141_v10, %v150_v16  ;;  %v156_v20 = vsel %vm154_vm1, %v139_v13, %v148_v17 }
  0x98   : > { %v160_v21 = vsub.f32 %v132_v0, %v157_v19  ;;  %v159_v22 = vsub.f32 %v131_v2, %v156_v20  ;;  %v181_v30 = vrot.slane %v174_v18, 1 }
  0x9a   : > { %v168_v24 = vrot.slane %v160_v21, 2  ;;  %v176_v25 = vmul.f32 2.0, %v160_v21  ;;  %v166_v26 = vrot.slane %v159_v22, 2  ;;  %v175_v27 = vmul.f32 2.0, %v159_v22  ;;  %v206_v28 = vpop.permute.xlu1 %205  ;;  %v204_v29 = vpop.permute.xlu0 %203 }
  0x9c   : > { %v184_v31 = vrot.slane %v176_v25, 1  ;;  %v167_v32 = vsel %vm164_vm0, %v165_v23, %v166_v26  ;;  %v169_v33 = vsel %vm164_vm0, %v166_v26, %v168_v24  ;;  %v182_v34 = vrot.slane %v175_v27, 1 }
  0x9d   : > { %v172_v35 = vadd.f32 %v167_v32, %v158_v15  ;;  %v173_v36 = vadd.f32 %v169_v33, %v159_v22 }
  0x9e   : > { %v183_v37 = vsel %vm180_vm2, %v181_v30, %v182_v34  ;;  %v185_v38 = vsel %vm180_vm2, %v182_v34, %v184_v31  ;;  %v212_v39 = vpop.permute.xlu1 %211  ;;  %v210_v40 = vpop.permute.xlu0 %209 }
  0x9f   : > { %v188_v41 = vadd.f32 %v183_v37, %v172_v35  ;;  %v189_v42 = vadd.f32 %v185_v38, %v173_v36  ;;  %v216_v47 = vsel %vm154_vm1, %v206_v28, %v212_v39  ;;  %v215_v48 = vsel %vm154_vm1, %v204_v29, %v210_v40 }
  0xa0   : > { %v218_v53 = vadd.f32 %v216_v47, %v571_v8  ;;  %v217_v54 = vadd.f32 %v215_v48, %v573_v9 }
  0xa1   : > { %v190_v43 = vmul.f32 2.0, %v188_v41  ;;  %v191_v44 = vmul.f32 2.0, %v189_v42 }
  0xa2   : > { %v222_v45 = vpop.permute.xlu1 %221  ;;  %v220_v46 = vpop.permute.xlu0 %219 }
  0xa3   : > { %241 = vst.msk [vmem:[%s123_s2] sm:$0xff] %vm240_vm3, %v190_v43  ;;  %242 = vst.msk [vmem:[%s123_s2 + $0x8] sm:$0xff] %vm240_vm3, %v191_v44 }
  0xa6   : > { %v228_v49 = vpop.permute.xlu1 %227  ;;  %v226_v50 = vpop.permute.xlu0 %225 }
  0xa7   : > { %v233_v51 = vsel %vm231_vm4, %v222_v45, %v228_v49  ;;  %v232_v52 = vsel %vm231_vm4, %v220_v46, %v226_v50 }
  0xa8   : > { %v235_v55 = vmul.f32 2.0, %v233_v51  ;;  %v234_v56 = vmul.f32 2.0, %v232_v52 }
  0xaa   : > { %v237_v57 = vadd.f32 %v235_v55, %v218_v53  ;;  %v236_v58 = vadd.f32 %v234_v56, %v217_v54 }
  0xac   : > { %v239_v59 = vmul.f32 2.0, %v237_v57  ;;  %v238_v60 = vmul.f32 2.0, %v236_v58 }
  0xae   : > { %343 = vst.msk [vmem:[%s123_s2 + $0x18] sm:$0xff] %vm240_vm3, %v239_v59  ;;  %342 = vst.msk [vmem:[%s123_s2 + $0x10] sm:$0xff] %vm240_vm3, %v238_v60 }
  0xaf   : > { %425 = shalt.err (!%p422_p5)
}
  0xb0   : > { %s426_s22 = scalar_lea.hbm %s601_s13, 512  ;;  %s430_s25 = scalar_lea.hbm %s656_s1, 1024 }
  0xb1   : > { %p427_p6 = scmp.ne.s32.totalorder %s601_s13, %s426_s22  ;;  %p431_p10 = scmp.lt.u32.totalorder %s601_s13, %s656_s1 }
  0xb2   : > { %p432_p11 = scmp.lt.u32.totalorder %s430_s25, %s426_s22  ;;  %p434_p13 = scmp.lt.u32.totalorder %s426_s22, %s601_s13 }
  0xb3   : > { %p428_p7 = pnand %p427_p6, %p549_p4 }
  0xb4   : > { %p433_p12 = por %p432_p11, %p431_p10 }
  0xb5   : > { %p429_p9 = pneg %p428_p7 }
  0xb6   : > { %p435_p0 = por %p434_p13, %p433_p12 }
  0xb8   : > { %p436_p1 = pnand %p435_p0, %p429_p9 }
  0xba   : > { %439 = shalt.err (!%p436_p1)
}
  0xbb   : > { %s497_s28 = smov 128   ;;  %s498_s29 = smov 8  }
  0xbc   : > { %351 = dma.vmem_to_hbm [thread:$0]  (%p549_p4), %s603_s4, 512, %s601_s13, %s609_s9, %s497_s28, %s497_s28, %s498_s29  }
  0xbd PF: > { %p357_p2 = scmp.ge.s32.totalorder %s490_s11, 2  ;;  %s277_s30 = sand.u32 1, %s470_s6  }
  0xbe   : > { %s278_s2 = scalar_lea.sflag [#allocation3], %s277_s30 }
  0xbf   : > { %p354_p3 = pnand %p357_p2, %p556_p8 }
  0xc1   : > { %465 = dma.done.wait (!%p354_p3), %s278_s2, 512  }
  0xc2   : > { %467 = vsyncadd (!%p354_p3), %s278_s2, 4294966784  ;;  %s14_s11 = sadd.s32 1, %s490_s11   ;;  %s659_s6 = smov %s474_s7 }
  0xc3   : > { %p11_p5 = scmp.ge.s32.totalorder %s14_s11, 4   ;;  %s660_s7 = smov %s478_s8 }
  0xc4   : > { %s661_s8 = smov %s562_s19  ;;  %s662_s9 = smov %s486_s10 }
  0xc5   : > { %s663_s10 = smov %s665_s14  ;;  %13 = sbr.rel (!%p11_p5) target bundleno = 4 (0x4), region = 60 }
  0xcc   :  { %283 = vsyncpa [#allocation3], 1 }
  0xcd   :  { %285 = vsyncpa [#allocation3 + $0x1], 1 }

</bundles_post_ra>
